<compile_context>
chip_gen: v5e
topology: v5e:2x2
jax: 0.10.0
libtpu: 0.0.40
codegen_flags: <defaults>
</compile_context>

<pallas_src>
import math
import jax
import jax.numpy as jnp
from jax.experimental import pallas as pl
from jax.experimental.pallas import tpu as pltpu


# ------------------------------- kernels ------------------------------------


def _make_single_pass_kernel(has_bias):
    """grid = (c, b); tk == D, no reduction grid axis, no scratch."""

    def kernel(*refs):
        if has_bias:
            x_ref, w_ref, b_ref, o_ref = refs
        else:
            x_ref, w_ref, o_ref = refs
        # x_ref: (tb, tc, D), w_ref: (1, tc, D), b_ref: (1, tc), o_ref: (tb, tc)
        prod = x_ref[...].astype(jnp.float32) * w_ref[...].astype(jnp.float32)
        out = jnp.sum(prod, axis=-1)                        # (tb, tc)
        if has_bias:
            out = out + b_ref[...].astype(jnp.float32)      # (1, tc) broadcast
        o_ref[...] = out.astype(o_ref.dtype)

    return kernel


def _make_accum_kernel(has_bias):
    """grid = (c, b, k); lane-partial f32 accumulator, epilogue reduce."""

    def kernel(*refs):
        if has_bias:
            x_ref, w_ref, b_ref, o_ref, acc_ref = refs
        else:
            x_ref, w_ref, o_ref, acc_ref = refs
        # x_ref: (tb, tc, tk)  w_ref: (1, tc, tk)  b_ref: (1, tc)
        # o_ref: (tb, tc)      acc_ref: (tb, tc, 128) f32
        k = pl.program_id(2)

        @pl.when(k == 0)
        def _():
            acc_ref[...] = jnp.zeros_like(acc_ref)

        prod = x_ref[...].astype(jnp.float32) * w_ref[...].astype(jnp.float32)
        tk = prod.shape[-1]   # static; guaranteed multiple of 128 when K > 1
        # Pure-VPU lane-tile partial sums inside the k-loop.  Static,
        # 128-aligned slices of the last dim are plain lane-tile selects.
        part = prod[:, :, 0:128]
        for g in range(1, tk // 128):
            part = part + prod[:, :, g * 128:(g + 1) * 128]
        acc_ref[...] += part

        @pl.when(k == pl.num_programs(2) - 1)
        def _():
            # Single cross-lane reduce + sublane->lane relayout per block.
            out = jnp.sum(acc_ref[...], axis=-1)            # (tb, tc)
            if has_bias:
                out = out + b_ref[...].astype(jnp.float32)
            o_ref[...] = out.astype(o_ref.dtype)

    return kernel


# --------------------------- tile selection ----------------------------------


def _hw_params():
    """Return (vmem_limit_bytes, x_block_target_bytes, want_multicore_split)."""
    cap = None
    try:
        cap = getattr(pltpu.get_tpu_info(), "vmem_capacity_bytes", None)
    except Exception:
        cap = None
    if cap is None:
        cap = 64 * 1024 * 1024            # conservative default (v7x-sized)
    if cap <= 64 * 1024 * 1024:
        # v7x-class: 64 MiB VMEM per TensorCore, 2 TCs share HBM.
        vmem_limit = min(int(0.75 * cap), 48 * 1024 * 1024)
        x_target = 4 * 1024 * 1024
        multicore = True
    else:
        # v5e / v6e: 128 MiB physical VMEM, single TensorCore.
        vmem_limit = min(int(0.75 * cap), 96 * 1024 * 1024)
        x_target = 8 * 1024 * 1024
        multicore = False
    return vmem_limit, x_target, multicore


def _round_down(v, m):
    return (v // m) * m


def _choose_tiles(B, C, D, itemsize, vmem_limit_bytes, x_target_bytes,
                  want_multicore_split):
    """Pick (tb, tc, tk). Never exceeds the VMEM budget; prefers tk == D."""
    # dtype-aware sublane granularity for the (tb, tc) output block
    sub = {1: 32, 2: 16}.get(itemsize, 8)

    # Class tile: lane-dense output (multiple of 128) when possible, else full
    # C (output block's last dim must be a multiple of 128 or equal C).
    tc = 128 if C >= 128 else C

    # Usable budget for kernel buffers; leave headroom inside the compiler
    # limit for Mosaic-internal scratch / alignment padding.
    budget = int(0.80 * vmem_limit_bytes)

    def fits(tb, tk, lane_partial_acc):
        x_blk = tb * tc * tk * itemsize
        w_blk = tc * tk * itemsize
        o_blk = tb * tc * itemsize
        bias = tc * 4
        acc = tb * tc * (128 if lane_partial_acc else 0) * 4
        # inputs and outputs are double-buffered by the Pallas pipeline
        return 2 * (x_blk + w_blk + o_blk + bias) + acc <= budget

    def pick_tb(tk, lane_partial_acc):
        bytes_per_row = max(1, tc * tk * itemsize)
        tb_t = max(1, x_target_bytes // bytes_per_row)
        if tb_t >= B and fits(B, tk, lane_partial_acc):
            return B                      # full-B block (always layout-legal)
        if B < sub:
            return B if fits(B, tk, lane_partial_acc) else None
        # exceed the x-target rather than tiling D: start at >= one sublane tile
        tb = min(max(_round_down(tb_t, sub), sub), _round_down(B, sub))
        while tb >= sub:
            if fits(tb, tk, lane_partial_acc):
                return tb
            tb -= sub
        return None

    # 1) Preferred: full-D blocks (K == 1) -> W is DMA'd from HBM exactly once.
    tb, tk = pick_tb(D, lane_partial_acc=False), D
    if tb is None:
        # 2) Must tile the reduction axis.  Only clean 128-multiple divisors of
        #    D are considered, so the reduction never sums padded garbage.
        if D % 128 == 0:
            start = max(128, _round_down(D // 2, 128))
            for cand in range(start, 127, -128):
                if D % cand == 0:
                    t = pick_tb(cand, lane_partial_acc=True)
                    if t is not None:
                        tb, tk = t, cand
                        break
        if tb is None:
            # TODO(synk): masked D tiling for gigantic non-128-multiple
            # hidden_dim; fall back to the smallest legal block and let the
            # compiler report if it truly cannot fit VMEM.
            tb, tk = (B if B < sub else sub), D

    # 3) On multi-TensorCore parts make sure the parallel (c, b) grid has at
    #    least 2 blocks so both cores share the HBM-bound work.
    if want_multicore_split and pl.cdiv(C, tc) * pl.cdiv(B, tb) == 1 and B > sub:
        half = ((B + 1) // 2 + sub - 1) // sub * sub
        if sub <= half < tb:
            tb = half

    return tb, tc, tk


# -------------------------------- wrapper ------------------------------------


def group_wise_linear(x, W, b=None, *, _tiles=None):
    """x: (B, C, D), W: (1, C, D), b: (1, C) or None -> (B, C)."""
    B, C, D = x.shape
    assert W.shape == (1, C, D), W.shape
    if b is not None:
        assert b.shape == (1, C), b.shape
    has_bias = b is not None

    vmem_limit, x_target, multicore = _hw_params()
    if _tiles is not None:
        tb, tc, tk = _tiles
    else:
        tb, tc, tk = _choose_tiles(B, C, D, x.dtype.itemsize, vmem_limit,
                                   x_target, multicore)
    nc, nb, nk = pl.cdiv(C, tc), pl.cdiv(B, tb), pl.cdiv(D, tk)

    if nk == 1:
        # Single reduction pass: no accumulator scratch, no k axis.  W's block
        # index (0, c, 0) is constant across the inner b axis -> each W tile is
        # fetched from HBM exactly once.  Bias index (0, c) likewise changes
        # only with c (nc tiny DMAs total).
        grid = (nc, nb)
        x_spec = pl.BlockSpec((tb, tc, tk), lambda c, bb: (bb, c, 0))
        w_spec = pl.BlockSpec((1, tc, tk), lambda c, bb: (0, c, 0))
        b_spec = pl.BlockSpec((1, tc), lambda c, bb: (0, c))
        o_spec = pl.BlockSpec((tb, tc), lambda c, bb: (bb, c))
        dims = ("parallel", "parallel")
        scratch = []
        kernel = _make_single_pass_kernel(has_bias)
    else:
        grid = (nc, nb, nk)
        x_spec = pl.BlockSpec((tb, tc, tk), lambda c, bb, k: (bb, c, k))
        w_spec = pl.BlockSpec((1, tc, tk), lambda c, bb, k: (0, c, k))
        b_spec = pl.BlockSpec((1, tc), lambda c, bb, k: (0, c))
        o_spec = pl.BlockSpec((tb, tc), lambda c, bb, k: (bb, c))
        dims = ("parallel", "parallel", "arbitrary")
        scratch = [pltpu.VMEM((tb, tc, 128), jnp.float32)]
        kernel = _make_accum_kernel(has_bias)

    in_specs = [x_spec, w_spec] + ([b_spec] if has_bias else [])
    operands = (x, W) + ((b,) if has_bias else ())

    # Honest advisory cost: when D is tiled (nk > 1) the W block index changes
    # with k, so W is re-fetched once per batch tile.
    w_passes = 1 if nk == 1 else nb
    bytes_accessed = (
        B * C * D * x.dtype.itemsize
        + w_passes * C * D * W.dtype.itemsize
        + (C * b.dtype.itemsize if has_bias else 0)
        + B * C * x.dtype.itemsize
    )
    cost = pl.CostEstimate(flops=2 * B * C * D, transcendentals=0,
                           bytes_accessed=bytes_accessed)
    cparams = pltpu.CompilerParams(
        dimension_semantics=dims,
        vmem_limit_bytes=vmem_limit,
    )
    grid_spec = pltpu.PrefetchScalarGridSpec(
        num_scalar_prefetch=0,
        grid=grid,
        in_specs=in_specs,
        out_specs=o_spec,
        scratch_shapes=scratch,
    )
    return pl.pallas_call(
        kernel,
        out_shape=jax.ShapeDtypeStruct((B, C), x.dtype),
        grid_spec=grid_spec,
        compiler_params=cparams,
        cost_estimate=cost,
    )(*operands)


def group_wise_linear_ref(x, W, b=None):
    out = jnp.sum(W.astype(jnp.float32) * x.astype(jnp.float32), axis=-1)
    if b is not None:
        out = out + b.astype(jnp.float32)
    return out.astype(x.dtype)


# --------------------------------- test --------------------------------------

if __name__ == "__main__":
    key = jax.random.PRNGKey(0)

    # ---- small shape matching the module's intent ---------------------------
    batch, num_class, hidden_dim = 2, 8, 32
    kx, kw, kb, key = jax.random.split(key, 4)
    stdv = 1.0 / math.sqrt(hidden_dim)
    W = jax.random.uniform(kw, (1, num_class, hidden_dim),
                           minval=-stdv, maxval=stdv, dtype=jnp.float32)
    b = jax.random.uniform(kb, (1, num_class), minval=-stdv, maxval=stdv,
                           dtype=jnp.float32)
    x = jax.random.normal(kx, (batch, num_class, hidden_dim), dtype=jnp.float32)

    out = jax.block_until_ready(group_wise_linear(x, W, b))
    ref = group_wise_linear_ref(x, W, b)
    assert out.shape == (batch, num_class)
    assert jnp.allclose(out, ref, atol=1e-5, rtol=1e-5), "mismatch (bias)"

    out_nb = jax.block_until_ready(group_wise_linear(x, W, None))
    ref_nb = group_wise_linear_ref(x, W, None)
    assert jnp.allclose(out_nb, ref_nb, atol=1e-5, rtol=1e-5), "mismatch (no bias)"

    # ---- multi-block (c, b) grid, single-pass kernel -------------------------
    B2, C2, D2 = 16, 256, 256
    kx2, kw2, kb2, key = jax.random.split(key, 4)
    stdv2 = 1.0 / math.sqrt(D2)
    W2 = jax.random.uniform(kw2, (1, C2, D2), minval=-stdv2, maxval=stdv2,
                            dtype=jnp.float32)
    b2 = jax.random.uniform(kb2, (1, C2), minval=-stdv2, maxval=stdv2,
                            dtype=jnp.float32)
    x2 = jax.random.normal(kx2, (B2, C2, D2), dtype=jnp.float32)

    out2 = jax.block_until_ready(group_wise_linear(x2, W2, b2))
    ref2 = group_wise_linear_ref(x2, W2, b2)
    assert out2.shape == (B2, C2)
    assert jnp.allclose(out2, ref2, atol=1e-4, rtol=1e-4), "mismatch (tiled)"

    # ---- force the K>1 lane-partial-accumulator path (small shape) ----------
    B3, C3, D3 = 16, 256, 512
    kx3, kw3, kb3, key = jax.random.split(key, 4)
    stdv3 = 1.0 / math.sqrt(D3)
    W3 = jax.random.uniform(kw3, (1, C3, D3), minval=-stdv3, maxval=stdv3,
                            dtype=jnp.float32)
    b3 = jax.random.uniform(kb3, (1, C3), minval=-stdv3, maxval=stdv3,
                            dtype=jnp.float32)
    x3 = jax.random.normal(kx3, (B3, C3, D3), dtype=jnp.float32)

    out3 = jax.block_until_ready(
        group_wise_linear(x3, W3, b3, _tiles=(8, 128, 128)))
    ref3 = group_wise_linear_ref(x3, W3, b3)
    assert jnp.allclose(out3, ref3, atol=1e-4, rtol=1e-4), \
        "mismatch (K>1 accumulator)"

    # ---- bf16 path (dtype-aware sublane rounding) ----------------------------
    kx4, kw4, kb4, key = jax.random.split(key, 4)
    W4 = jax.random.uniform(kw4, (1, 16, 64), minval=-0.1,
                            maxval=0.1).astype(jnp.bfloat16)
    b4 = jax.random.uniform(kb4, (1, 16), minval=-0.1,
                            maxval=0.1).astype(jnp.bfloat16)
    x4 = jax.random.normal(kx4, (4, 16, 64)).astype(jnp.bfloat16)
    out4 = jax.block_until_ready(group_wise_linear(x4, W4, b4))
    ref4 = group_wise_linear_ref(x4, W4, b4)
    assert jnp.allclose(out4.astype(jnp.float32), ref4.astype(jnp.float32),
                        atol=2e-2, rtol=2e-2), "mismatch (bf16)"

    print("KERNEL_OK")
</pallas_src>

<mosaic_0001>
module attributes {stable_mosaic.version = 11 : i64} {
  func.func @kernel(%arg0: i32, %arg1: i32, %arg2: memref<2x8x32xf32, #tpu.memory_space<vmem>>, %arg3: memref<1x8x32xf32, #tpu.memory_space<vmem>>, %arg4: memref<1x8xf32, #tpu.memory_space<vmem>>, %arg5: memref<2x8xf32, #tpu.memory_space<vmem>>) attributes {dimension_semantics = [#tpu.dimension_semantics<parallel>, #tpu.dimension_semantics<parallel>], iteration_bounds = array<i64: 1, 1>, scalar_prefetch = 0 : i64, scratch_operands = 0 : i64, tpu.core_type = #tpu.core_type<tc>, window_params = [{transform_indices = @transform_0, window_bounds = array<i64: 2, 8, 32>}, {transform_indices = @transform_1, window_bounds = array<i64: 1, 8, 32>}, {transform_indices = @transform_2, window_bounds = array<i64: 1, 8>}, {transform_indices = @transform_3, window_bounds = array<i64: 2, 8>}]} {
    %c0 = arith.constant 0 : index
    %c0_0 = arith.constant 0 : index
    %c0_1 = arith.constant 0 : index
    %0 = vector.load %arg2[%c0, %c0_0, %c0_1] : memref<2x8x32xf32, #tpu.memory_space<vmem>>, vector<2x8x32xf32>
    %c0_2 = arith.constant 0 : index
    %c0_3 = arith.constant 0 : index
    %c0_4 = arith.constant 0 : index
    %1 = vector.load %arg3[%c0_2, %c0_3, %c0_4] : memref<1x8x32xf32, #tpu.memory_space<vmem>>, vector<1x8x32xf32>
    %2 = vector.broadcast %1 : vector<1x8x32xf32> to vector<2x8x32xf32>
    %3 = arith.mulf %0, %2 : vector<2x8x32xf32>
    %cst = arith.constant dense<0.000000e+00> : vector<2x8xf32>
    %4 = vector.multi_reduction <add>, %3, %cst [2] : vector<2x8x32xf32> to vector<2x8xf32>
    %c0_5 = arith.constant 0 : index
    %c0_6 = arith.constant 0 : index
    %5 = vector.load %arg4[%c0_5, %c0_6] : memref<1x8xf32, #tpu.memory_space<vmem>>, vector<1x8xf32>
    %6 = vector.broadcast %5 : vector<1x8xf32> to vector<2x8xf32>
    %7 = arith.addf %4, %6 : vector<2x8xf32>
    %c0_7 = arith.constant 0 : index
    %c0_8 = arith.constant 0 : index
    %8 = vector.load %arg5[%c0_7, %c0_8] : memref<2x8xf32, #tpu.memory_space<vmem>>, vector<2x8xf32>
    tpu.vector_store %arg5[%c0_7, %c0_8], %7 {strides = array<i32>} : memref<2x8xf32, #tpu.memory_space<vmem>>, vector<2x8xf32>,
    return
  }
  func.func @transform_0(%arg0: i32, %arg1: i32) -> (i32, i32, i32) {
    %c0_i32 = arith.constant 0 : i32
    %c0_i32_0 = arith.constant 0 : i32
    return %arg1, %arg0, %c0_i32 : i32, i32, i32
  }
  func.func @transform_1(%arg0: i32, %arg1: i32) -> (i32, i32, i32) {
    %c0_i32 = arith.constant 0 : i32
    %c0_i32_0 = arith.constant 0 : i32
    %c0_i32_1 = arith.constant 0 : i32
    return %c0_i32, %arg0, %c0_i32_0 : i32, i32, i32
  }
  func.func @transform_2(%arg0: i32, %arg1: i32) -> (i32, i32) {
    %c0_i32 = arith.constant 0 : i32
    %c0_i32_0 = arith.constant 0 : i32
    return %c0_i32, %arg0 : i32, i32
  }
  func.func @transform_3(%arg0: i32, %arg1: i32) -> (i32, i32) {
    %c0_i32 = arith.constant 0 : i32
    return %arg1, %arg0 : i32, i32
  }
}

</mosaic_0001>

<bundles_post_ra>
// kernel: tpu_custom_call.1
= control target key start
LH: loop header
LB: loop body
LE: loop exit
PB: predicated region body
PF: predicated region fallthrough
CT: control target
= control target key end

     0   :  { %8 = vsyncpa [#allocation3], 0  ;;  %s231_s0 = inlined_call_operand.hbm [shape: f32[2,8,32], index: 0, kind: input, shape index: {}]   ;;  %s232_s1 = inlined_call_operand.hbm [shape: f32[1,8,32], index: 1, kind: input, shape index: {}]   ;;  %s233_s2 = inlined_call_operand.vmem [shape: f32[1,8], index: 2, kind: input, shape index: {}]   ;;  %s234_s3 = inlined_call_operand.hbm [shape: f32[2,8], index: 3, kind: output, shape index: {}]  }
   0x1   :  { %9 = vsyncpa [#allocation6], 0 }
   0x2   :  { %10 = vsyncpa [#allocation4], 0  ;;  %s15_s14 = sshll.u32 %s231_s0, 4  ;;  %s193_s15 = smov [#allocation2]   ;;  %s16_s14 = int_to_ptr.hbm [resolvable:$true] %s15_s14 }
   0x3   :  { %s17_s16 = sshll.u32 %s193_s15, 4  ;;  %s29_s19 = sshll.u32 %s232_s1, 4  ;;  %s18_s16 = int_to_ptr.vmem [resolvable:$true] %s17_s16  ;;  %s30_s19 = int_to_ptr.hbm [resolvable:$true] %s29_s19 }
   0x4   :  { %s194_s20 = smov 128   ;;  %s195_s21 = smov 8  }
   0x5   :  { %23 = dma.hbm_to_vmem [thread:$0]  %s16_s14, 256, %s18_s16, [#allocation3], %s194_s20, %s194_s20, %s195_s21  }
   0x6   :  { %s196_s22 = smov [#allocation5]  }
   0x7   :  { %s31_s23 = sshll.u32 %s196_s22, 4  ;;  %s32_s23 = int_to_ptr.vmem [resolvable:$true] %s31_s23 }
   0x8   :  { %34 = dma.hbm_to_vmem [thread:$0]  %s30_s19, 128, %s32_s23, [#allocation6]  }
   0x9   :  { %187 = dma.done.wait [#allocation3], 256  }
   0xa   :  { %188 = vsyncadd [#allocation3], 4294967040 }
   0xb   :  { %189 = dma.done.wait [#allocation6], 128  }
   0xc   :  { %190 = vsyncadd [#allocation6], 4294967168  ;;  %v60_v0 = vlaneseq  ;;  %v45_v2 = vld [vmem:[#allocation2] sm:$0xff]  ;;  %v47_v3 = vld [vmem:[#allocation5] sm:$0xff]  ;;  %vm50_vm0 = vcmask 261120   ;;  %v197_v10 = vmov 0  }
   0xd   :  { %v48_v4 = vmul.f32 %v47_v3, %v45_v2  ;;  %v114_v5 = vld [vmem:[%s233_s2] ss:$0 sm:$0xff]  ;;  %v46_v6 = vld [vmem:[#allocation2 + $0x8] sm:$0xff]  ;;  %112 = vset.pattern.permute.xlu2 %v197_v10  ;;  %113 = vset.pattern.permute.xlu0 %v197_v10  ;;  %s198_s2 = smov [#allocation7]   ;;  %s93_s27 = sshll.u32 %s234_s3, 4  ;;  %vm81_vm1 = vcmask 1041409   ;;  %s94_s27 = int_to_ptr.hbm [resolvable:$true] %s93_s27 }
   0xe   :  { %v61_v1 = vshrl.u32 %v60_v0, 7  ;;  %v49_v8 = vmul.f32 %v47_v3, %v46_v6  ;;  %v78_v16 = vand.u32 127, %v60_v0  ;;  %s91_s24 = sshll.u32 %s198_s2, 4  ;;  %vm84_vm2 = vcmask 58368   ;;  %s92_s24 = int_to_ptr.vmem [resolvable:$true] %s91_s24 }
   0xf   :  { %v51_v7 = vsel %vm50_vm0, %v48_v4, 0.0 }
  0x10   :  { %110 = vset.pattern.permute.xlu1 %v61_v1  ;;  %52 = vadd.xlane.f32.xlu0 %v51_v7  ;;  %v54_v9 = vsel %vm50_vm0, %v49_v8, 0.0 }
  0x18   :  { %64 = vperm.xlu1 %110, %v114_v5   ;;  %55 = vadd.xlane.f32.xlu0 %v54_v9 }
  0x20   :  { %111 = vset.pattern.permute.xlu1 %v197_v10 }
  0x83   :  { %v53_v12 = vpop.xlane.xlu0 %52 }
  0x8a   :  { %v65_v11 = vpop.permute.xlu1 %64 }
  0x8b   :  { %v67_v13 = vadd.f32 %v65_v11, %v53_v12  ;;  %v56_v14 = vpop.xlane.xlu0 %55 }
  0x8c   :  { %v68_v15 = vadd.f32 %v65_v11, %v56_v14 }
  0x8d   :  { %72 = vperm.xlu1 %111, %v67_v13  }
  0x8e   :  { %75 = vperm.xlu2 %112, %v68_v15  }
  0xe8   :  { %v76_v17 = vpop.permute.xlu2 %75 }
  0xe9   :  { %v80_v19 = vperm.slane %v76_v17, %v78_v16 }
  0xff   :  { %v73_v18 = vpop.permute.xlu1 %72 }
 0x100   :  { %v79_v20 = vperm.slane %v73_v18, %v78_v16 }
 0x102   :  { %v82_v21 = vsel %vm81_vm1, %v80_v19, %v79_v20 }
 0x103   :  { %85 = vst.msk [vmem:[#allocation7] sm:$0x3] %vm84_vm2, %v82_v21 }
 0x104   :  { %96 = dma.vmem_to_hbm [thread:$0]  %s92_s24, 32, %s94_s27, [#allocation4]  }
 0x105   :  { %191 = dma.done.wait [#allocation4], 32  }
 0x106   :  { %192 = vsyncadd [#allocation4], 4294967264 }
 0x107   :  { %101 = vsyncpa [#allocation3], 1 }
 0x108   :  { %102 = vsyncpa [#allocation6], 1 }
 0x109   :  { %103 = vsyncpa [#allocation4], 1 }

</bundles_post_ra>
